<compile_context>
chip_gen: v7x
topology: tpu7x:2x2x1
jax: 0.10.0
libtpu: 0.0.40
codegen_flags: <defaults>
</compile_context>

<pallas_src>
import math
from functools import partial

import jax
import jax.numpy as jnp
from jax.experimental import pallas as pl
from jax.experimental.pallas import tpu as pltpu

_LANE = 128

# ~2 MiB blocks: elementwise streaming saturates HBM by ~0.5-1 MiB blocks, so
# 2 MiB keeps the ~0.35 us/step overhead negligible while (in + out) x double
# buffering = 8 MiB fits v5e's 16 MiB default scoped VMEM and stays tiny on
# v7x's 64 MiB physical VMEM.
_TARGET_BLOCK_BYTES = 2 * 1024 * 1024
_VMEM_LIMIT_BYTES = 32 * 1024 * 1024
# For tensors bigger than this, force at least _MIN_GRID grid steps so v7x's
# two TensorCores both get work and DMA in/out overlap stays pipelined.
_MIN_SPLIT_BYTES = 1024 * 1024
_MIN_GRID = 4


def _sublane_count(dtype) -> int:
    # f32 tiles are (8, 128); sub-32-bit dtypes pack along sublanes (16 for
    # bf16/f16).  Hswish is a float op; integer inputs are not supported.
    return 8 * max(1, 4 // jnp.dtype(dtype).itemsize)


def _hswish_kernel(x_ref, o_ref):
    x = x_ref[...]
    # relu6(x + 3) = clamp(x + 3, 0, 6).  Mem-bound: keep the math simple.
    r6 = jnp.minimum(jnp.maximum(x + 3.0, 0.0), 6.0)
    o_ref[...] = (x * r6 * (1.0 / 6.0)).astype(o_ref.dtype)


def _compiler_params(n_grid_axes):
    # "parallel" lets the runtime shard the grid across v7x's two TensorCores.
    # TODO(synk): if a v7x profile shows only one TC busy, switch the leading
    # grid axis to pltpu.CORE_PARALLEL.
    return pltpu.CompilerParams(
        dimension_semantics=("parallel",) * n_grid_axes,
        vmem_limit_bytes=_VMEM_LIMIT_BYTES,
    )


def _cost(total, itemsize):
    return pl.CostEstimate(
        flops=5 * total, transcendentals=0, bytes_accessed=2 * total * itemsize
    )


def _hswish_lane_dense(x, alias):
    """total % 128 == 0: stream a lane-dense (rows, 128) slab (no pad)."""
    total = x.size
    itemsize = jnp.dtype(x.dtype).itemsize
    rows = total // _LANE
    x2d = x.reshape(rows, _LANE)  # metadata-only under jit for contiguous input
    sub = _sublane_count(x.dtype)

    if rows <= sub:
        tile_rows = rows  # full-extent block is always legal
    else:
        tile_rows = max(sub, (_TARGET_BLOCK_BYTES // (_LANE * itemsize)) // sub * sub)
        if total * itemsize >= _MIN_SPLIT_BYTES:
            # Cap tile so there are >= _MIN_GRID blocks (v7x 2-TC split).
            cap = max(sub, math.ceil(math.ceil(rows / _MIN_GRID) / sub) * sub)
            tile_rows = min(tile_rows, cap)
        tile_rows = min(tile_rows, rows)

    grid = (pl.cdiv(rows, tile_rows),)  # ragged last block masked by Pallas

    out2d = pl.pallas_call(
        _hswish_kernel,
        out_shape=jax.ShapeDtypeStruct((rows, _LANE), x.dtype),
        grid_spec=pltpu.PrefetchScalarGridSpec(
            num_scalar_prefetch=0,
            grid=grid,
            in_specs=[pl.BlockSpec((tile_rows, _LANE), lambda i: (i, 0))],
            out_specs=pl.BlockSpec((tile_rows, _LANE), lambda i: (i, 0)),
        ),
        compiler_params=_compiler_params(1),
        cost_estimate=_cost(total, itemsize),
        input_output_aliases=alias,
    )(x2d)
    return out2d.reshape(x.shape)


def _hswish_ragged(x, alias):
    """total % 128 != 0: run un-padded (no extra HBM pad/slice passes).

    Leading dims are merged; the last two dims stay intact so every block's
    trailing dims equal the full array dims (layout-legal for any H, W).  Only
    the leading / sublane axes are tiled; ragged blocks are masked by Pallas.
    """
    total = x.size
    dtype = x.dtype
    itemsize = jnp.dtype(dtype).itemsize
    if x.ndim >= 2:
        d1, d2 = x.shape[-2], x.shape[-1]
    else:
        d1, d2 = 1, max(1, total)
    lead = total // (d1 * d2)
    x3 = x.reshape(lead, d1, d2)

    sub = _sublane_count(dtype)
    row_bytes = d2 * itemsize
    per_lead_bytes = d1 * row_bytes

    if per_lead_bytes <= _TARGET_BLOCK_BYTES:
        tile_d1 = d1
        tile_lead = max(1, _TARGET_BLOCK_BYTES // per_lead_bytes)
        if total * itemsize >= _MIN_SPLIT_BYTES:
            tile_lead = min(tile_lead, max(1, math.ceil(lead / _MIN_GRID)))
        tile_lead = min(tile_lead, lead)
    else:
        # One leading slice already exceeds the target block: tile the sublane
        # axis too (multiples of `sub` keep the block layout-legal).
        tile_lead = 1
        tile_d1 = max(sub, (_TARGET_BLOCK_BYTES // row_bytes) // sub * sub)
        tile_d1 = min(tile_d1, d1)
        # NOTE: a single row with d2*itemsize >> target is not split further;
        # not a realistic activation shape for this module.

    grid = (pl.cdiv(lead, tile_lead), pl.cdiv(d1, tile_d1))

    out3 = pl.pallas_call(
        _hswish_kernel,
        out_shape=jax.ShapeDtypeStruct((lead, d1, d2), dtype),
        grid_spec=pltpu.PrefetchScalarGridSpec(
            num_scalar_prefetch=0,
            grid=grid,
            in_specs=[pl.BlockSpec((tile_lead, tile_d1, d2), lambda i, j: (i, j, 0))],
            out_specs=pl.BlockSpec((tile_lead, tile_d1, d2), lambda i, j: (i, j, 0)),
        ),
        compiler_params=_compiler_params(2),
        cost_estimate=_cost(total, itemsize),
        input_output_aliases=alias,
    )(x3)
    return out3.reshape(x.shape)


@partial(jax.jit, static_argnames=("donate",))
def hswish(x, donate=False):
    """Elementwise hard-swish matching torch: x * relu6(x + 3) / 6.

    Pass donate=True only when the caller also donates `x` to its own jit; the
    output then aliases the input HBM buffer (halves allocation footprint).
    """
    if x.size == 0:
        return x
    alias = {0: 0} if donate else {}
    if x.size % _LANE == 0:
        return _hswish_lane_dense(x, alias)
    return _hswish_ragged(x, alias)


def _hswish_ref(x):
    return x * jnp.clip(x + 3.0, 0.0, 6.0) / 6.0


if __name__ == "__main__":
    key = jax.random.PRNGKey(0)

    # NCHW, as the PyTorch module would receive from a conv stack.
    x = jax.random.normal(key, (2, 4, 16, 16), dtype=jnp.float32) * 4.0
    out = jax.block_until_ready(hswish(x))
    assert out.shape == x.shape and out.dtype == x.dtype
    assert jnp.allclose(out, _hswish_ref(x), atol=1e-6, rtol=1e-6)

    # Ragged total (not a multiple of 128): exercises the un-padded N-D path.
    x2 = jax.random.normal(jax.random.PRNGKey(1), (3, 7, 33, 65), jnp.float32) * 4.0
    out2 = jax.block_until_ready(hswish(x2))
    assert out2.shape == x2.shape
    assert jnp.allclose(out2, _hswish_ref(x2), atol=1e-6, rtol=1e-6)

    # >= 1 MiB tensor: exercises the multi-block lane-dense path (grid >= 4).
    x3 = jax.random.normal(jax.random.PRNGKey(2), (8, 32, 32, 32), jnp.float32) * 4.0
    out3 = jax.block_until_ready(hswish(x3))
    assert out3.shape == x3.shape
    assert jnp.allclose(out3, _hswish_ref(x3), atol=1e-6, rtol=1e-6)

    print("KERNEL_OK")
</pallas_src>

<mosaic_0001>
module attributes {stable_mosaic.version = 11 : i64} {
  func.func @_hswish_kernel(%arg0: i32, %arg1: memref<16x128xf32, #tpu.memory_space<vmem>>, %arg2: memref<16x128xf32, #tpu.memory_space<vmem>>) attributes {dimension_semantics = [#tpu.dimension_semantics<parallel>], iteration_bounds = array<i64: 1>, scalar_prefetch = 0 : i64, scratch_operands = 0 : i64, tpu.core_type = #tpu.core_type<tc>, window_params = [{transform_indices = @transform_0, window_bounds = array<i64: 16, 128>}, {transform_indices = @transform_1, window_bounds = array<i64: 16, 128>}]} {
    %c0 = arith.constant 0 : index
    %c0_0 = arith.constant 0 : index
    %0 = vector.load %arg1[%c0, %c0_0] : memref<16x128xf32, #tpu.memory_space<vmem>>, vector<16x128xf32>
    %cst = arith.constant 3.000000e+00 : f32
    %1 = vector.broadcast %cst : f32 to vector<16x128xf32>
    %2 = arith.addf %0, %1 : vector<16x128xf32>
    %cst_1 = arith.constant 0.000000e+00 : f32
    %3 = vector.broadcast %cst_1 : f32 to vector<16x128xf32>
    %4 = arith.maximumf %2, %3 : vector<16x128xf32>
    %cst_2 = arith.constant 6.000000e+00 : f32
    %5 = vector.broadcast %cst_2 : f32 to vector<16x128xf32>
    %6 = arith.minimumf %4, %5 : vector<16x128xf32>
    %7 = arith.mulf %0, %6 : vector<16x128xf32>
    %cst_3 = arith.constant 0.166666672 : f32
    %8 = vector.broadcast %cst_3 : f32 to vector<16x128xf32>
    %9 = arith.mulf %7, %8 : vector<16x128xf32>
    %c0_4 = arith.constant 0 : index
    %c0_5 = arith.constant 0 : index
    %10 = vector.load %arg2[%c0_4, %c0_5] : memref<16x128xf32, #tpu.memory_space<vmem>>, vector<16x128xf32>
    tpu.vector_store %arg2[%c0_4, %c0_5], %9 {strides = array<i32>} : memref<16x128xf32, #tpu.memory_space<vmem>>, vector<16x128xf32>,
    return
  }
  func.func @transform_0(%arg0: i32) -> (i32, i32) {
    %c0_i32 = arith.constant 0 : i32
    %c0_i32_0 = arith.constant 0 : i32
    return %arg0, %c0_i32 : i32, i32
  }
  func.func @transform_1(%arg0: i32) -> (i32, i32) {
    %c0_i32 = arith.constant 0 : i32
    %c0_i32_0 = arith.constant 0 : i32
    return %arg0, %c0_i32 : i32, i32
  }
}

</mosaic_0001>

<bundles_post_ra>
// kernel: hswish.1
= control target key start
LH: loop header
LB: loop body
LE: loop exit
PB: predicated region body
PF: predicated region fallthrough
CT: control target
= control target key end

     0   :  { %s48_s0 = inlined_call_operand.vmem [shape: f32[16,128], index: 0, kind: input, shape index: {}]   ;;  %s49_s1 = inlined_call_operand.vmem [shape: f32[16,128], index: 1, kind: output, shape index: {}]  }
   0x1   :  { %v8_v0 = vld [vmem:[%s48_s0] sm:$0xff]  ;;  %v9_v1 = vld [vmem:[%s48_s0 + $0x8] sm:$0xff] }
   0x2   :  { %v10_v2 = vadd.f32 3.0, %v8_v0  ;;  %v11_v3 = vadd.f32 3.0, %v9_v1 }
   0x4   :  { %v12_v4 = vmax.f32 %v10_v2, 0.0  ;;  %v13_v5 = vmax.f32 %v11_v3, 0.0 }
   0x6   :  { %v14_v6 = vmin.f32 %v12_v4, 6.0  ;;  %v15_v7 = vmin.f32 %v13_v5, 6.0 }
   0x8   :  { %v16_v8 = vmul.f32 %v14_v6, %v8_v0  ;;  %v17_v9 = vmul.f32 %v15_v7, %v9_v1 }
   0xa   :  { %v18_v10 = vmul.f32 0.16666667, %v16_v8  ;;  %v19_v11 = vmul.f32 0.16666667, %v17_v9 }
   0xc   :  { %20 = vst [vmem:[%s49_s1] sm:$0xff] %v18_v10  ;;  %21 = vst [vmem:[%s49_s1 + $0x8] sm:$0xff] %v19_v11 }

</bundles_post_ra>
